<compile_context>
chip_gen: v6e
topology: v6e:2x2x1
jax: 0.10.0
libtpu: 0.0.40
codegen_flags: <defaults>
</compile_context>

<pallas_src>
import jax
import jax.numpy as jnp
from jax.experimental import pallas as pl
from jax.experimental.pallas import tpu as pltpu

_LANE = 128


# ----------------------------------------------------------------------------
# Fused Pallas kernel: one two-layer GCN stack per grid step (grid axis = graph).
# ----------------------------------------------------------------------------
def _gcn2_stack_kernel(a_ref, d_ref, x_ref, w1_ref, b1_ref, w2_ref, b2_ref, o_ref):
    f32, bf16 = jnp.float32, jnp.bfloat16

    a = a_ref[...]          # (N, N)   bf16, raw A + I (unnormalized)
    d = d_ref[...]          # (N, 1)   f32,  D^-1/2
    x = x_ref[...]          # (N, Fin) bf16

    in_pad = x.shape[1]
    hid_pad = w1_ref.shape[1]

    # ---- layer 1:  H = relu( D^-1/2 (A+I) D^-1/2 X W1 + b1 ) ---------------
    # Pick the association so the N^2-scaled aggregation matmul runs over the
    # narrower padded lane width (static shapes -> resolved at trace time).
    if hid_pad <= in_pad:
        z = jnp.dot(x, w1_ref[...], preferred_element_type=f32)        # (N, hid)
        z = (d * z).astype(bf16)                                        # fold right D^-1/2
        h = d * jnp.dot(a, z, preferred_element_type=f32) + b1_ref[...]
    else:
        z = d * jnp.dot(a, (d * x.astype(f32)).astype(bf16),
                        preferred_element_type=f32)                     # (N, Fin)
        h = jnp.dot(z.astype(bf16), w1_ref[...],
                    preferred_element_type=f32) + b1_ref[...]
    h = jnp.maximum(h, 0.0)          # ReLU; dropout == identity (eval mode)

    # ---- layer 2:  out = D^-1/2 (A+I) D^-1/2 H W2 + b2 ---------------------
    z2 = jnp.dot(h.astype(bf16), w2_ref[...], preferred_element_type=f32)
    z2 = (d * z2).astype(bf16)
    o_ref[...] = (d * jnp.dot(a, z2, preferred_element_type=f32)
                  + b2_ref[...]).astype(o_ref.dtype)


def encoder_gcn2_pallas(a, d, x, w1, b1, w2, b2):
    """a:(G,N,N) bf16, d:(G,N,1) f32, x:(G,N,Fin) bf16, weights bf16, biases f32."""
    g, n, _ = a.shape
    in_pad, hid_pad, out_pad = x.shape[2], w1.shape[2], w2.shape[2]

    def spec(arr):
        nd = arr.ndim
        return pl.BlockSpec((None,) + tuple(arr.shape[1:]),
                            lambda gi, _nd=nd: (gi,) + (0,) * (_nd - 1))

    inputs = (a, d, x, w1, b1, w2, b2)
    out_shape = jax.ShapeDtypeStruct((g, n, out_pad), jnp.float32)
    out_spec = pl.BlockSpec((None, n, out_pad), lambda gi: (gi, 0, 0))

    in_bytes = int(sum(int(arr.size) * arr.dtype.itemsize for arr in inputs))
    out_bytes = int(g * n * out_pad * 4)
    flops = int(2 * g * (n * in_pad * hid_pad + n * n * hid_pad
                         + n * hid_pad * out_pad + n * n * out_pad))
    cost = pl.CostEstimate(flops=flops, transcendentals=0,
                           bytes_accessed=in_bytes + out_bytes)

    # double-buffered blocks + headroom, clamped well under v7x's 64 MiB VMEM.
    vmem_limit = int(min(max(2 * (in_bytes + out_bytes) + (4 << 20), 16 << 20),
                         48 << 20))

    return pl.pallas_call(
        _gcn2_stack_kernel,
        out_shape=out_shape,
        grid=(g,),
        in_specs=[spec(arr) for arr in inputs],
        out_specs=out_spec,
        compiler_params=pltpu.CompilerParams(
            dimension_semantics=("parallel",),   # 2 TCs on v7x; serial elsewhere
            vmem_limit_bytes=vmem_limit),
        cost_estimate=cost,
    )(*inputs)


# ----------------------------------------------------------------------------
# Glue: raw (A + I) and D^-1/2 from edge_index (normalization happens in-kernel).
# ----------------------------------------------------------------------------
def adjacency_with_self_loops(edge_index, num_nodes, num_nodes_pad):
    src, dst = edge_index[0], edge_index[1]
    a = jnp.zeros((num_nodes_pad, num_nodes_pad), jnp.float32)
    a = a.at[dst, src].add(1.0)                         # message src -> dst
    self_loop = (jnp.arange(num_nodes_pad) < num_nodes).astype(jnp.float32)
    a = a + jnp.diag(self_loop)                         # self-loops (real nodes only)
    deg = jnp.sum(a, axis=1)
    d_inv_sqrt = jnp.where(deg > 0.0, 1.0 / jnp.sqrt(jnp.maximum(deg, 1.0)), 0.0)
    return a, d_inv_sqrt


# ----------------------------------------------------------------------------
# Parameters + padding helpers.
# ----------------------------------------------------------------------------
def make_gcn_params(key, f_in, f_out):
    kw, kb = jax.random.split(key)
    limit = float(jnp.sqrt(6.0 / (f_in + f_out)))
    w = jax.random.uniform(kw, (f_in, f_out), jnp.float32, -limit, limit)
    b = jax.random.uniform(kb, (f_out,), jnp.float32, -0.1, 0.1)
    return w, b


def _round_up(n, m):
    return ((n + m - 1) // m) * m


def _pad2(x, rows, cols):
    return jnp.pad(x, ((0, rows - x.shape[0]), (0, cols - x.shape[1])))


class EncoderGCN2Pallas:
    """Mirrors EncoderGCN2.forward; dropout is identity (eval mode)."""

    def __init__(self, key, fl, fg, hidden_features, out_features):
        self.out_features = out_features
        self.fin_x, self.fin_y = 2 * fl, 2 * fg
        self.in_pad = _round_up(max(self.fin_x, self.fin_y), _LANE)
        self.hidden_pad = _round_up(hidden_features, _LANE)
        self.out_pad = _round_up(out_features, _LANE)

        k = jax.random.split(key, 4)
        # unpadded f32 params (used by the pure-JAX reference)
        self.w1x, self.b1x = make_gcn_params(k[0], self.fin_x, hidden_features)
        self.w2x, self.b2x = make_gcn_params(k[1], hidden_features, out_features)
        self.w1y, self.b1y = make_gcn_params(k[2], self.fin_y, hidden_features)
        self.w2y, self.b2y = make_gcn_params(k[3], hidden_features, out_features)

        # stacked, zero-padded, bf16 weights / f32 biases fed to the kernel
        self.w1_stack = jnp.stack([
            _pad2(self.w1x, self.in_pad, self.hidden_pad),
            _pad2(self.w1y, self.in_pad, self.hidden_pad)]).astype(jnp.bfloat16)
        self.b1_stack = jnp.stack([
            _pad2(self.b1x.reshape(1, -1), 1, self.hidden_pad),
            _pad2(self.b1y.reshape(1, -1), 1, self.hidden_pad)]).astype(jnp.float32)
        self.w2_stack = jnp.stack([
            _pad2(self.w2x, self.hidden_pad, self.out_pad),
            _pad2(self.w2y, self.hidden_pad, self.out_pad)]).astype(jnp.bfloat16)
        self.b2_stack = jnp.stack([
            _pad2(self.b2x.reshape(1, -1), 1, self.out_pad),
            _pad2(self.b2y.reshape(1, -1), 1, self.out_pad)]).astype(jnp.float32)

    def __call__(self, data):
        x = data["x_data_matrix"]
        y = data["y_data_matrix"]
        n_x, n_y = x.shape[0], y.shape[0]
        n_pad = _round_up(max(n_x, n_y), 8)

        a_x, d_x = adjacency_with_self_loops(data["x_edge_index"], n_x, n_pad)
        a_y, d_y = adjacency_with_self_loops(data["y_edge_index"], n_y, n_pad)

        a_stack = jnp.stack([a_x, a_y]).astype(jnp.bfloat16)        # exact 0/1 values
        d_stack = jnp.stack([d_x, d_y]).reshape(2, n_pad, 1).astype(jnp.float32)
        x_stack = jnp.stack([
            _pad2(x, n_pad, self.in_pad),
            _pad2(y, n_pad, self.in_pad)]).astype(jnp.bfloat16)

        out = encoder_gcn2_pallas(a_stack, d_stack, x_stack,
                                  self.w1_stack, self.b1_stack,
                                  self.w2_stack, self.b2_stack)
        # slice back to logical node count / out_features (tiny, plain JAX)
        return (out[0, :n_x, :self.out_features],
                out[1, :n_y, :self.out_features])


if __name__ == "__main__":
    key = jax.random.PRNGKey(0)

    # Small synthetic config: args.fl=4, args.fg=6, hidden=32, out=16, p_drop=0.5
    fl, fg, hidden, out = 4, 6, 32, 16
    n_x, n_y = 16, 12          # different node counts exercise node padding
    e_x, e_y = 24, 20          # number of edges

    k_fx, k_fy, k_ex, k_ey, k_params = jax.random.split(key, 5)
    x_data = jax.random.normal(k_fx, (n_x, 2 * fl), jnp.float32)
    y_data = jax.random.normal(k_fy, (n_y, 2 * fg), jnp.float32)
    x_edge_index = jax.random.randint(k_ex, (2, e_x), 0, n_x, jnp.int32)
    y_edge_index = jax.random.randint(k_ey, (2, e_y), 0, n_y, jnp.int32)

    data = {
        "x_data_matrix": x_data,
        "x_edge_index": x_edge_index,
        "y_data_matrix": y_data,
        "y_edge_index": y_edge_index,
    }

    model = EncoderGCN2Pallas(k_params, fl, fg, hidden, out)
    x_out, y_out = model(data)
    jax.block_until_ready((x_out, y_out))

    assert x_out.shape == (n_x, out) and y_out.shape == (n_y, out)

    # Pure-JAX f32 reference (module semantics, no padding, no Pallas).
    def ref_gcn2(edge_index, feats, w1, b1, w2, b2):
        n = feats.shape[0]
        a_raw, dv = adjacency_with_self_loops(edge_index, n, n)
        a_hat = dv[:, None] * a_raw * dv[None, :]
        h = jnp.maximum(a_hat @ (feats @ w1) + b1[None, :], 0.0)
        return a_hat @ (h @ w2) + b2[None, :]

    x_ref = ref_gcn2(x_edge_index, x_data, model.w1x, model.b1x, model.w2x, model.b2x)
    y_ref = ref_gcn2(y_edge_index, y_data, model.w1y, model.b1y, model.w2y, model.b2y)

    # bf16 operands with f32 accumulation -> relaxed (but still tight) tolerance.
    assert jnp.allclose(x_out, x_ref, atol=3e-2, rtol=3e-2)
    assert jnp.allclose(y_out, y_ref, atol=3e-2, rtol=3e-2)

    print("KERNEL_OK")
</pallas_src>

<mosaic_0001>
module attributes {stable_mosaic.version = 11 : i64} {
  func.func @_gcn2_stack_kernel(%arg0: i32, %arg1: memref<1x16x16xbf16, #tpu.memory_space<vmem>>, %arg2: memref<1x16x1xf32, #tpu.memory_space<vmem>>, %arg3: memref<1x16x128xbf16, #tpu.memory_space<vmem>>, %arg4: memref<1x128x128xbf16, #tpu.memory_space<vmem>>, %arg5: memref<1x1x128xf32, #tpu.memory_space<vmem>>, %arg6: memref<1x128x128xbf16, #tpu.memory_space<vmem>>, %arg7: memref<1x1x128xf32, #tpu.memory_space<vmem>>, %arg8: memref<1x16x128xf32, #tpu.memory_space<vmem>>) attributes {dimension_semantics = [#tpu.dimension_semantics<parallel>], iteration_bounds = array<i64: 2>, scalar_prefetch = 0 : i64, scratch_operands = 0 : i64, tpu.core_type = #tpu.core_type<tc>, window_params = [{transform_indices = @transform_0, window_bounds = array<i64: 1, 16, 16>}, {transform_indices = @transform_1, window_bounds = array<i64: 1, 16, 1>}, {transform_indices = @transform_2, window_bounds = array<i64: 1, 16, 128>}, {transform_indices = @transform_3, window_bounds = array<i64: 1, 128, 128>}, {transform_indices = @transform_4, window_bounds = array<i64: 1, 1, 128>}, {transform_indices = @transform_5, window_bounds = array<i64: 1, 128, 128>}, {transform_indices = @transform_6, window_bounds = array<i64: 1, 1, 128>}, {transform_indices = @transform_7, window_bounds = array<i64: 1, 16, 128>}]} {
    %c0 = arith.constant 0 : index
    %c0_0 = arith.constant 0 : index
    %c0_1 = arith.constant 0 : index
    %0 = vector.load %arg1[%c0, %c0_0, %c0_1] : memref<1x16x16xbf16, #tpu.memory_space<vmem>>, vector<1x16x16xbf16>
    %1 = vector.shape_cast %0 : vector<1x16x16xbf16> to vector<16x16xbf16>
    %c0_2 = arith.constant 0 : index
    %c0_3 = arith.constant 0 : index
    %c0_4 = arith.constant 0 : index
    %2 = vector.load %arg2[%c0_2, %c0_3, %c0_4] : memref<1x16x1xf32, #tpu.memory_space<vmem>>, vector<1x16x1xf32>
    %3 = vector.shape_cast %2 : vector<1x16x1xf32> to vector<16x1xf32>
    %c0_5 = arith.constant 0 : index
    %c0_6 = arith.constant 0 : index
    %c0_7 = arith.constant 0 : index
    %4 = vector.load %arg3[%c0_5, %c0_6, %c0_7] : memref<1x16x128xbf16, #tpu.memory_space<vmem>>, vector<1x16x128xbf16>
    %5 = vector.shape_cast %4 : vector<1x16x128xbf16> to vector<16x128xbf16>
    %c0_8 = arith.constant 0 : index
    %c0_9 = arith.constant 0 : index
    %c0_10 = arith.constant 0 : index
    %6 = vector.load %arg4[%c0_8, %c0_9, %c0_10] : memref<1x128x128xbf16, #tpu.memory_space<vmem>>, vector<1x128x128xbf16>
    %7 = vector.shape_cast %6 : vector<1x128x128xbf16> to vector<128x128xbf16>
    %cst = arith.constant dense<0.000000e+00> : vector<16x128xf32>
    %8 = tpu.matmul %5, %7, %cst {dimension_numbers = #tpu.dot_dimension_numbers<[1], [0], [0], [1], [0, 0, 1, 1], [], []>} : vector<16x128xbf16>, vector<128x128xbf16>, vector<16x128xf32> -> vector<16x128xf32>
    %9 = vector.broadcast %3 : vector<16x1xf32> to vector<16x128xf32>
    %10 = arith.mulf %9, %8 : vector<16x128xf32>
    %11 = arith.truncf %10 : vector<16x128xf32> to vector<16x128xbf16>
    %cst_11 = arith.constant dense<0.000000e+00> : vector<16x128xf32>
    %12 = tpu.matmul %1, %11, %cst_11 {dimension_numbers = #tpu.dot_dimension_numbers<[1], [0], [0], [1], [0, 0, 1, 1], [], []>} : vector<16x16xbf16>, vector<16x128xbf16>, vector<16x128xf32> -> vector<16x128xf32>
    %13 = vector.broadcast %3 : vector<16x1xf32> to vector<16x128xf32>
    %14 = arith.mulf %13, %12 : vector<16x128xf32>
    %c0_12 = arith.constant 0 : index
    %c0_13 = arith.constant 0 : index
    %c0_14 = arith.constant 0 : index
    %15 = vector.load %arg5[%c0_12, %c0_13, %c0_14] : memref<1x1x128xf32, #tpu.memory_space<vmem>>, vector<1x1x128xf32>
    %16 = vector.shape_cast %15 : vector<1x1x128xf32> to vector<1x128xf32>
    %17 = vector.broadcast %16 : vector<1x128xf32> to vector<16x128xf32>
    %18 = arith.addf %14, %17 : vector<16x128xf32>
    %cst_15 = arith.constant 0.000000e+00 : f32
    %19 = vector.broadcast %cst_15 : f32 to vector<16x128xf32>
    %20 = arith.maximumf %18, %19 : vector<16x128xf32>
    %21 = arith.truncf %20 : vector<16x128xf32> to vector<16x128xbf16>
    %c0_16 = arith.constant 0 : index
    %c0_17 = arith.constant 0 : index
    %c0_18 = arith.constant 0 : index
    %22 = vector.load %arg6[%c0_16, %c0_17, %c0_18] : memref<1x128x128xbf16, #tpu.memory_space<vmem>>, vector<1x128x128xbf16>
    %23 = vector.shape_cast %22 : vector<1x128x128xbf16> to vector<128x128xbf16>
    %cst_19 = arith.constant dense<0.000000e+00> : vector<16x128xf32>
    %24 = tpu.matmul %21, %23, %cst_19 {dimension_numbers = #tpu.dot_dimension_numbers<[1], [0], [0], [1], [0, 0, 1, 1], [], []>} : vector<16x128xbf16>, vector<128x128xbf16>, vector<16x128xf32> -> vector<16x128xf32>
    %25 = vector.broadcast %3 : vector<16x1xf32> to vector<16x128xf32>
    %26 = arith.mulf %25, %24 : vector<16x128xf32>
    %27 = arith.truncf %26 : vector<16x128xf32> to vector<16x128xbf16>
    %cst_20 = arith.constant dense<0.000000e+00> : vector<16x128xf32>
    %28 = tpu.matmul %1, %27, %cst_20 {dimension_numbers = #tpu.dot_dimension_numbers<[1], [0], [0], [1], [0, 0, 1, 1], [], []>} : vector<16x16xbf16>, vector<16x128xbf16>, vector<16x128xf32> -> vector<16x128xf32>
    %29 = vector.broadcast %3 : vector<16x1xf32> to vector<16x128xf32>
    %30 = arith.mulf %29, %28 : vector<16x128xf32>
    %c0_21 = arith.constant 0 : index
    %c0_22 = arith.constant 0 : index
    %c0_23 = arith.constant 0 : index
    %31 = vector.load %arg7[%c0_21, %c0_22, %c0_23] : memref<1x1x128xf32, #tpu.memory_space<vmem>>, vector<1x1x128xf32>
    %32 = vector.shape_cast %31 : vector<1x1x128xf32> to vector<1x128xf32>
    %33 = vector.broadcast %32 : vector<1x128xf32> to vector<16x128xf32>
    %34 = arith.addf %30, %33 : vector<16x128xf32>
    %c0_24 = arith.constant 0 : index
    %c0_25 = arith.constant 0 : index
    %c0_26 = arith.constant 0 : index
    %35 = vector.load %arg8[%c0_24, %c0_25, %c0_26] : memref<1x16x128xf32, #tpu.memory_space<vmem>>, vector<1x16x128xf32>
    %36 = vector.shape_cast %35 : vector<1x16x128xf32> to vector<16x128xf32>
    %37 = vector.shape_cast %34 : vector<16x128xf32> to vector<1x16x128xf32>
    tpu.vector_store %arg8[%c0_24, %c0_25, %c0_26], %37 {strides = array<i32>} : memref<1x16x128xf32, #tpu.memory_space<vmem>>, vector<1x16x128xf32>,
    return
  }
  func.func @transform_0(%arg0: i32) -> (i32, i32, i32) {
    %c0_i32 = arith.constant 0 : i32
    %c0_i32_0 = arith.constant 0 : i32
    %c0_i32_1 = arith.constant 0 : i32
    return %arg0, %c0_i32, %c0_i32_0 : i32, i32, i32
  }
  func.func @transform_1(%arg0: i32) -> (i32, i32, i32) {
    %c0_i32 = arith.constant 0 : i32
    %c0_i32_0 = arith.constant 0 : i32
    %c0_i32_1 = arith.constant 0 : i32
    return %arg0, %c0_i32, %c0_i32_0 : i32, i32, i32
  }
  func.func @transform_2(%arg0: i32) -> (i32, i32, i32) {
    %c0_i32 = arith.constant 0 : i32
    %c0_i32_0 = arith.constant 0 : i32
    %c0_i32_1 = arith.constant 0 : i32
    return %arg0, %c0_i32, %c0_i32_0 : i32, i32, i32
  }
  func.func @transform_3(%arg0: i32) -> (i32, i32, i32) {
    %c0_i32 = arith.constant 0 : i32
    %c0_i32_0 = arith.constant 0 : i32
    %c0_i32_1 = arith.constant 0 : i32
    return %arg0, %c0_i32, %c0_i32_0 : i32, i32, i32
  }
  func.func @transform_4(%arg0: i32) -> (i32, i32, i32) {
    %c0_i32 = arith.constant 0 : i32
    %c0_i32_0 = arith.constant 0 : i32
    %c0_i32_1 = arith.constant 0 : i32
    return %arg0, %c0_i32, %c0_i32_0 : i32, i32, i32
  }
  func.func @transform_5(%arg0: i32) -> (i32, i32, i32) {
    %c0_i32 = arith.constant 0 : i32
    %c0_i32_0 = arith.constant 0 : i32
    %c0_i32_1 = arith.constant 0 : i32
    return %arg0, %c0_i32, %c0_i32_0 : i32, i32, i32
  }
  func.func @transform_6(%arg0: i32) -> (i32, i32, i32) {
    %c0_i32 = arith.constant 0 : i32
    %c0_i32_0 = arith.constant 0 : i32
    %c0_i32_1 = arith.constant 0 : i32
    return %arg0, %c0_i32, %c0_i32_0 : i32, i32, i32
  }
  func.func @transform_7(%arg0: i32) -> (i32, i32, i32) {
    %c0_i32 = arith.constant 0 : i32
    %c0_i32_0 = arith.constant 0 : i32
    %c0_i32_1 = arith.constant 0 : i32
    return %arg0, %c0_i32, %c0_i32_0 : i32, i32, i32
  }
}

</mosaic_0001>

<bundles_post_ra>
// kernel: tpu_custom_call.1
= control target key start
LH: loop header
LB: loop body
LE: loop exit
PB: predicated region body
PF: predicated region fallthrough
CT: control target
= control target key end

     0   :  { %s1630_s0 = inlined_call_operand.vmem [shape: bf16[2,16,16], index: 0, kind: input, shape index: {}]   ;;  %s1631_s1 = inlined_call_operand.vmem [shape: f32[2,16,1], index: 1, kind: input, shape index: {}]   ;;  %s1632_s2 = inlined_call_operand.vmem [shape: bf16[2,16,128], index: 2, kind: input, shape index: {}]   ;;  %s1633_s3 = inlined_call_operand.hbm [shape: bf16[2,128,128], index: 3, kind: input, shape index: {}]   ;;  %s1634_s4 = inlined_call_operand.vmem [shape: f32[2,1,128], index: 4, kind: input, shape index: {}]   ;;  %s1635_s5 = inlined_call_operand.hbm [shape: bf16[2,128,128], index: 5, kind: input, shape index: {}]   ;;  %s1636_s6 = inlined_call_operand.vmem [shape: f32[2,1,128], index: 6, kind: input, shape index: {}]   ;;  %s1637_s7 = inlined_call_operand.hbm [shape: f32[2,16,128], index: 7, kind: output, shape index: {}]  }
   0x1   :  { %1643 = sst [smem:[#allocation12_spill]] %s1633_s3 }
   0x2   :  { %12 = vsyncpa [#allocation3], 0 }
   0x3   :  { %14 = vsyncpa [#allocation3 + $0x1], 0 }
   0x4   :  { %15 = vsyncpa [#allocation6], 0 }
   0x5   :  { %17 = vsyncpa [#allocation6 + $0x1], 0 }
   0x6   :  { %18 = vsyncpa [#allocation4], 0 }
   0x7   :  { %20 = vsyncpa [#allocation4 + $0x1], 0  ;;  %s1325_s24 = smov 0   ;;  %s1327_s25 = smov 0  }
   0x8   :  { %s1329_s26 = smov 0   ;;  %s1331_s27 = smov 0  }
   0x9 LB: > { %s1346_s28 = sadd.s32 4294967295, %s1273_s27   ;;  %s946_s29 = sadd.s32 4294967294, %s1273_s27   ;;  %s1273_s27 = sphi %s1331_s27, %s1663_s27   ;;  %s1269_s26 = sphi %s1329_s26, %s1662_s26   ;;  %s1265_s25 = sphi %s1327_s25, %s1661_s25   ;;  %s1261_s24 = sphi %s1325_s24, %s1660_s24  }
   0xa   : > { %s1350_s30 = sadd.s32 1, %s1273_s27   ;;  %s111_s8 = sadd.s32 1, %s1269_s26 }
   0xb   : > { %s108_s9 = ssub.s32 %s1273_s27, %s1350_s30  ;;  %p118_p0 = scmp.ne.s32.totalorder %s1269_s26, %s1265_s25 }
   0xc   : > { %p109_p1 = scmp.eq.s32.totalorder %s108_s9, 0  ;;  %p119_p2 = scmp.eq.s32.totalorder %s1273_s27, 0 }
   0xd   : > { %p124_p3 = scmp.ne.s32.totalorder %s1265_s25, %s1261_s24  ;;  %p125_p4 = scmp.eq.s32.totalorder %s1346_s28, 0 }
   0xe   : > { %s1362_s10 = scalar_select %p109_p1, %s1269_s26, %s111_s8  }
   0xf   : > { %p1364_p5 = por %p119_p2, %p118_p0  ;;  %p1368_p6 = por %p125_p4, %p124_p3 }
  0x10   : > { %1644 = sst [smem:[#allocation11_spill]] %s1362_s10  ;;  %p226_p7 = scmp.eq.s32.totalorder %s1346_s28, 1 }
  0x11   : > { %s1646_s12 = scalar_select %p1368_p6, 1, 0 }
  0x12   : > { %p232_p8 = scmp.eq.s32.totalorder %s946_s29, 1  ;;  %p1089_p10 = scmp.lt.s32.totalorder %s1273_s27, 2 }
  0x13   : > { %p1375_p11 = por %p226_p7, %p118_p0  ;;  %s1384_s15 = sand.u32 1, %s1269_s26  }
  0x14   : > { %p1379_p12 = por %p232_p8, %p124_p3  ;;  %s1639_s16 = sshll.u32 %s1273_s27, 10 }
  0x15   : > { %s1647_s13 = scalar_select %p1375_p11, 1, 0 }
  0x16   : > { %s1648_s14 = scalar_select %p1379_p12, 1, 0 }
  0x17   : > { %s1638_s17 = sshll.u32 %s1384_s15, 6  ;;  %s1649_s3 = sld [smem:[#allocation12_spill]] }
  0x18   : > { %s280_s21 = scalar_lea.vmem [#allocation2], %s1638_s17  ;;  %p1399_p13 = pnand %p1089_p10, %p1364_p5 }
  0x19   : > { %s287_s22 = sshll.u32 %s280_s21, 4  ;;  %s277_s29 = scalar_lea.sflag [#allocation3], %s1384_s15  ;;  %s1403_s22 = int_to_ptr.vmem [resolvable:$true] %s287_s22 }
  0x1a   : > { %p1151_p1 = pneg %p1399_p13 }
  0x1d   : > { %s1393_s20 = scalar_lea.hbm %s1649_s3, %s1639_s16  ;;  %s1154_s11 = scalar_lea.hbm %s1649_s3, 2048 }
  0x1e   : > { %s1149_s8 = scalar_lea.hbm %s1393_s20, 1024  ;;  %p1155_p4 = scmp.lt.s32.totalorder %s1393_s20, %s1649_s3 }
  0x1f   : > { %p1150_p0 = scmp.ne.s32.totalorder %s1393_s20, %s1149_s8  ;;  %p1156_p5 = scmp.lt.s32.totalorder %s1154_s11, %s1149_s8 }
  0x21   : > { %p1152_p2 = pnand %p1151_p1, %p1150_p0  ;;  %p1157_p7 = por %p1156_p5, %p1155_p4 }
  0x23   : > { %p1153_p3 = pneg %p1152_p2 }
  0x25   : > { %p1158_p8 = pnand %p1157_p7, %p1153_p3 }
  0x27   : > { %1161 = shalt.err (!%p1158_p8)
}
  0x28   : > { %s1162_s17 = scalar_lea.vmem %s1403_s22, 1024  ;;  %s1275_s9 = smov [#allocation2]  }
  0x29   : > { %p1163_p10 = scmp.ne.s32.totalorder %s1403_s22, %s1162_s17  ;;  %s1167_s18 = sshll.u32 %s1275_s9, 4  ;;  %s1168_s18 = int_to_ptr.vmem [resolvable:$false] %s1167_s18 }
  0x2a   : > { %s1169_s16 = scalar_lea.vmem %s1168_s18, 2048  ;;  %p1170_p9 = scmp.lt.s32.totalorder %s1403_s22, %s1168_s18 }
  0x2b   : > { %p1165_p0 = pnand %p1163_p10, %p1151_p1  ;;  %p1171_p12 = scmp.lt.s32.totalorder %s1169_s16, %s1162_s17 }
  0x2d   : > { %p1166_p2 = pneg %p1165_p0  ;;  %p1172_p11 = por %p1171_p12, %p1170_p9 }
  0x2f   : > { %p1173_p4 = pnand %p1172_p11, %p1166_p2 }
  0x31   : > { %1176 = shalt.err (!%p1173_p4)
}
  0x32   : > { %s1641_s8 = smov 64   ;;  %s1277_s11 = smov 4  }
  0x33   : > { %1081 = dma.hbm_to_vmem [thread:$0]  (!%p1399_p13), %s1393_s20, 1024, %s1403_s22, %s277_s29, %s1641_s8, %s1641_s8, %s1277_s11  }
  0x34   : > { %p955_p9 = scmp.ge.s32.totalorder %s1273_s27, 1  ;;  %p328_p11 = scmp.lt.s32.totalorder %s1273_s27, 3 }
  0x35   : > { %s1652_s17 = sshll.u32 %s1273_s27, 10  ;;  %s1653_s18 = sshll.u32 %s1384_s15, 6 }
  0x36   : > { %p1437_p12 = pnand %p955_p9, %p328_p11  ;;  %s1446_s9 = scalar_lea.hbm %s1635_s5, %s1652_s17 }
  0x37   : > { %s307_s3 = scalar_lea.vmem [#allocation5], %s1653_s18  ;;  %s304_s20 = scalar_lea.sflag [#allocation6], %s1384_s15 }
  0x38   : > { %s314_s10 = sshll.u32 %s307_s3, 4  ;;  %s1177_s22 = scalar_lea.hbm %s1446_s9, 1024  ;;  %s1450_s10 = int_to_ptr.vmem [resolvable:$true] %s314_s10 }
  0x39   : > { %p1178_p3 = scmp.ne.s32.totalorder %s1446_s9, %s1177_s22  ;;  %s1182_s17 = scalar_lea.hbm %s1635_s5, 2048 }
  0x3a   : > { %p1183_p8 = scmp.lt.s32.totalorder %s1446_s9, %s1635_s5  ;;  %p1184_p10 = scmp.lt.s32.totalorder %s1182_s17, %s1177_s22 }
  0x3b   : > { %p1180_p5 = pnand %p1178_p3, %p1151_p1 }
  0x3c   : > { %p1185_p0 = por %p1184_p10, %p1183_p8 }
  0x3d   : > { %p1181_p7 = pneg %p1180_p5 }
  0x3f   : > { %p1186_p2 = pnand %p1185_p0, %p1181_p7 }
  0x41   : > { %1189 = shalt.err (!%p1186_p2)
}
  0x42   : > { %s1190_s3 = scalar_lea.vmem %s1450_s10, 1024  ;;  %s1278_s15 = smov [#allocation5]  }
  0x43   : > { %p1191_p4 = scmp.ne.s32.totalorder %s1450_s10, %s1190_s3  ;;  %s1195_s8 = sshll.u32 %s1278_s15, 4  ;;  %s1196_s8 = int_to_ptr.vmem [resolvable:$false] %s1195_s8 }
  0x44   : > { %s1197_s18 = scalar_lea.vmem %s1196_s8, 2048  ;;  %p1198_p3 = scmp.lt.s32.totalorder %s1450_s10, %s1196_s8 }
  0x45   : > { %p1193_p9 = pnand %p1191_p4, %p1151_p1  ;;  %p1199_p5 = scmp.lt.s32.totalorder %s1197_s18, %s1190_s3 }
  0x47   : > { %p1194_p11 = pneg %p1193_p9  ;;  %p1200_p6 = por %p1199_p5, %p1198_p3 }
  0x49   : > { %p1201_p8 = pnand %p1200_p6, %p1194_p11 }
  0x4b   : > { %1204 = shalt.err (!%p1201_p8)
}
  0x4c   : > { %s1654_s22 = smov 64   ;;  %332 = sbr.rel (%p1437_p12) target bundleno = 946 (0x3b2), region = 48 }
  0x4d   : > { %1084 = dma.hbm_to_vmem [thread:$0]  (!%p1399_p13), %s1446_s9, 1024, %s1450_s10, %s304_s20, %s1654_s22, %s1654_s22, %s1277_s11  }
  0x4e   : > { %s1481_s29 = sand.u32 (!%p1437_p12), 1, %s1265_s25   ;;  %p1655_p6 = scmp.ne.s32.totalorder (!%p1437_p12), %s1646_s12, 0 }
  0x4f   : > { %s956_s17 = sshll.u32 (!%p1437_p12), %s1481_s29, 6  ;;  %s335_s19 = scalar_lea.sflag (!%p1437_p12), [#allocation3], %s1481_s29 }
  0x50   : > { %s1485_s21 = scalar_lea.vmem (!%p1437_p12), [#allocation2], %s956_s17 }
  0x51   : > { %1248 = dma.done.wait (%p1655_p6), %s335_s19, 1024  }
  0x52   : > { %1250 = vsyncadd (%p1655_p6), %s335_s19, 4294966272  ;;  %s344_s10 = scalar_lea.sflag [#allocation6], %s1481_s29  ;;  %s1492_s23 = scalar_lea.vmem [#allocation5], %s956_s17 }
  0x53   : > { %1252 = dma.done.wait (%p1655_p6), %s344_s10, 1024  }
  0x54   : > { %1254 = vsyncadd (%p1655_p6), %s344_s10, 4294966272  ;;  %v1279_v0 = vmov 0.0   ;;  %vm1280_vm0 = vmmov 0   ;;  %v1281_v1 = vmov 0   ;;  %p404_p13 = scmp.lt.s32.totalorder %s1346_s28, 1  ;;  %v1131_v2 = vld [vmem:[%s1485_s21 + $0x38] sm:$0xff]  }
  0x55   : > { %1020 = vmatprep.subr.bf16.mxu0 %v1279_v0  ;;  %1036 = vmatprep.mubr.msk.bf16.mxu0 %vm1280_vm0, %v1279_v0  ;;  %v1132_v3 = vld [vmem:[%s1485_s21 + $0x30] sm:$0xff]   ;;  %v1133_v4 = vld [vmem:[%s1485_s21 + $0x28] sm:$0xff]   ;;  %v1134_v5 = vld [vmem:[%s1485_s21 + $0x20] sm:$0xff]   ;;  %vm561_vm1 = vcmask 130048   ;;  %s958_s20 = sshll.u32 %s1481_s29, 4  ;;  %s997_s8 = sshll.u32 %s1346_s28, 8 }
  0x56   : > { %1130 = vset.pattern.permute.xlu0 %v1281_v1  ;;  %1040 = vmatprep.subr.bf16.mxu1 %v1279_v0  ;;  %s1507_s12 = scalar_select %p404_p13, %s1346_s28, 1  ;;  %v1135_v8 = vld [vmem:[%s1485_s21 + $0x18] sm:$0xff]   ;;  %v1136_v9 = vld [vmem:[%s1485_s21 + $0x10] sm:$0xff]   ;;  %v1137_v10 = vld [vmem:[%s1485_s21 + $0x8] sm:$0xff]  }
  0x57   : > { %1042 = vmatprep.mubr.msk.bf16.mxu1 %vm1280_vm0, %v1279_v0  ;;  %1021 = vmatpush3.bf16.msra.mxu0 %v1131_v2  ;;  %v1138_v11 = vld [vmem:[%s1485_s21] sm:$0xff]   ;;  %v1141_v23 = vld [vmem:[%s1492_s23 + $0x38] sm:$0xff]   ;;  %v1142_v24 = vld [vmem:[%s1492_s23 + $0x30] sm:$0xff]   ;;  %s1587_s22 = scalar_lea.hbm %s1637_s7, %s997_s8  ;;  %s783_s17 = scalar_lea.sflag [#allocation4], %s1481_s29 }
  0x58   : > { %1022 = vmatprep.subr.bf16.mxu0 %v1279_v0  ;;  %s995_s11 = sshll.u32 %s1507_s12, 4  ;;  %s994_s16 = sshll.u32 %s1507_s12, 3  ;;  %v1143_v25 = vld [vmem:[%s1492_s23 + $0x28] sm:$0xff]   ;;  %v1144_v26 = vld [vmem:[%s1492_s23 + $0x20] sm:$0xff]   ;;  %v1145_v27 = vld [vmem:[%s1492_s23 + $0x18] sm:$0xff]  }
  0x59   : > { %s413_s3 = scalar_lea.vmem %s1631_s1, %s995_s11  ;;  %s418_s18 = scalar_lea.vmem %s1632_s2, %s994_s16  ;;  %v1146_v28 = vld [vmem:[%s1492_s23 + $0x10] sm:$0xff]   ;;  %v1147_v29 = vld [vmem:[%s1492_s23 + $0x8] sm:$0xff]   ;;  %v1148_v30 = vld [vmem:[%s1492_s23] sm:$0xff]  }
  0x5a   : > { %s1525_s19 = scalar_lea.vmem %s1630_s0, %s994_s16  ;;  %v428_v6 = vld [vmem:[%s413_s3] sm:$0xff]  ;;  %v429_v7 = vld [vmem:[%s413_s3 + $0x8] sm:$0xff]  ;;  %s421_s11 = scalar_lea.vmem %s1634_s4, %s1507_s12 }
  0x5b   : > { %1023 = vmatpush3.bf16.msra.mxu0 %v1132_v3  ;;  %545 = vperm.xlu0 %1130, %v428_v6   ;;  %v1139_v12 = vld [vmem:[%s418_s18] sm:$0xff]   ;;  %s424_s9 = scalar_lea.vmem %s1636_s6, %s1507_s12  ;;  %s403_s3 = scalar_lea.vmem [#allocation7], %s958_s20 }
  0x5c   : > { %1024 = vmatprep.subr.bf16.mxu0 %v1279_v0  ;;  %v1140_v22 = vld [vmem:[%s1525_s19] sm:$0xff]   ;;  %s796_s15 = sshll.u32 %s403_s3, 4  ;;  %p1656_p12 = scmp.ne.s32.totalorder %s1647_s13, 0  ;;  %s1581_s15 = int_to_ptr.vmem [resolvable:$true] %s796_s15 }
  0x5d   : > { %v976_v33 = vld [vmem:[%s421_s11] ss:$0 sm:$0xff]  ;;  %s1205_s19 = scalar_lea.vmem %s1581_s15, 256  ;;  %s1282_s28 = smov [#allocation7]  }
  0x5e   : > { %v986_v51 = vld [vmem:[%s424_s9] ss:$0 sm:$0xff]  ;;  %p1206_p1 = scmp.ne.s32.totalorder %s1581_s15, %s1205_s19  ;;  %s1209_s21 = sshll.u32 %s1282_s28, 4  ;;  %s1210_s21 = int_to_ptr.vmem [resolvable:$false] %s1209_s21 }
  0x5f   : > { %1025 = vmatpush3.bf16.msra.mxu0 %v1133_v4  ;;  %550 = vperm.xlu0 %1130, %v429_v7   ;;  %s1211_s10 = scalar_lea.vmem %s1210_s21, 512  ;;  %p1212_p0 = scmp.lt.s32.totalorder %s1581_s15, %s1210_s21 }
  0x60   : > { %1026 = vmatprep.subr.bf16.mxu0 %v1279_v0  ;;  %p1207_p7 = pnand %p1206_p1, %p1656_p12  ;;  %p1213_p2 = scmp.lt.s32.totalorder %s1211_s10, %s1205_s19 }
  0x62   : > { %p1208_p10 = pneg %p1207_p7  ;;  %p1214_p4 = por %p1213_p2, %p1212_p0 }
  0x63   : > { %1027 = vmatpush3.bf16.msra.mxu0 %v1134_v5 }
  0x64   : > { %1028 = vmatprep.subr.bf16.mxu0 %v1279_v0  ;;  %p1215_p9 = pnand %p1214_p4, %p1208_p10 }
  0x67   : > { %1029 = vmatpush3.bf16.msra.mxu0 %v1135_v8 }
  0x68   : > { %1030 = vmatprep.subr.bf16.mxu0 %v1279_v0 }
  0x6b   : > { %1031 = vmatpush3.bf16.msra.mxu0 %v1136_v9 }
  0x6c   : > { %1032 = vmatprep.subr.bf16.mxu0 %v1279_v0 }
  0x6f   : > { %1033 = vmatpush3.bf16.msra.mxu0 %v1137_v10 }
  0x70   : > { %1034 = vmatprep.subr.bf16.mxu0 %v1279_v0 }
  0x73   : > { %1035 = vmatpush3.bf16.msra.mxu0 %v1138_v11 }
  0x74   : > { %1066 = vmatprep.subr.bf16.mxu0 %v1279_v0 }
  0x76   : > { %1037 = vmatmul.mubr.bf16.vlgmr.msra.gmra.mxu0 %v1139_v12 }
  0x77   : > { %1068 = vmatprep.mubr.msk.bf16.mxu0 %vm1280_vm0, %v1279_v0 }
  0xd6   : > { %v1539_v13 = vpop.permute.xlu0 %545 }
  0xda   : > { %v1541_v16 = vpop.permute.xlu0 %550 }
 0x136   : > { %v536_v14 = vpop.f32.mrf.mxu0 }
 0x137   : > { %v553_v18 = vmul.f32 %v1539_v13, %v536_v14 }
 0x138   : > { %v1038_v15 = vpop.f32.mrf.mxu0 }
 0x13a   : > { %v539_v17 = vpop.f32.mrf.mxu0 }
 0x13b   : > { %v554_v19 = vmul.f32 %v1541_v16, %v539_v17 }
 0x13c   : > { %v1039_v20 = vpop.f32.mrf.mxu0 }
 0x13d   : > { %v555_v21 = vpack.c.bf16 %v554_v19, %v553_v18 }
 0x13f   : > { %1041 = vmatpush3.bf16.msra.mxu1 %v555_v21 }
 0x140   : > { %1046 = vmatprep.subr.bf16.mxu1 %v1279_v0 }
 0x142   : > { %1043 = vmatmul.mubr.msk.bf16.vlgmr.msra.gmra.mxu1 %vm561_vm1, %v1140_v22 }
 0x143   : > { %1047 = vmatpush3.bf16.msra.mxu1 %v1141_v23  ;;  %1062 = vmatprep.mubr.msk.bf16.mxu1 %vm1280_vm0, %v1279_v0 }
 0x144   : > { %1048 = vmatprep.subr.bf16.mxu1 %v1279_v0 }
 0x147   : > { %1049 = vmatpush3.bf16.msra.mxu1 %v1142_v24 }
 0x148   : > { %1050 = vmatprep.subr.bf16.mxu1 %v1279_v0 }
 0x14b   : > { %1051 = vmatpush3.bf16.msra.mxu1 %v1143_v25 }
 0x14c   : > { %1052 = vmatprep.subr.bf16.mxu1 %v1279_v0 }
 0x14f   : > { %1053 = vmatpush3.bf16.msra.mxu1 %v1144_v26 }
 0x150   : > { %1054 = vmatprep.subr.bf16.mxu1 %v1279_v0 }
 0x153   : > { %1055 = vmatpush3.bf16.msra.mxu1 %v1145_v27 }
 0x154   : > { %1056 = vmatprep.subr.bf16.mxu1 %v1279_v0 }
 0x157   : > { %1057 = vmatpush3.bf16.msra.mxu1 %v1146_v28 }
 0x158   : > { %1058 = vmatprep.subr.bf16.mxu1 %v1279_v0 }
 0x15b   : > { %1059 = vmatpush3.bf16.msra.mxu1 %v1147_v29 }
 0x15c   : > { %1060 = vmatprep.subr.bf16.mxu1 %v1279_v0 }
 0x15f   : > { %1061 = vmatpush3.bf16.msra.mxu1 %v1148_v30 }
 0x202   : > { %v599_v31 = vpop.f32.mrf.mxu1 }
 0x203   : > { %v606_v32 = vmul.f32 %v599_v31, %v1539_v13 }
 0x204   : > { %v1044_v34 = vpop.f32.mrf.mxu1 }
 0x205   : > { %v615_v36 = vadd.f32 %v976_v33, %v606_v32 }
 0x206   : > { %v602_v35 = vpop.f32.mrf.mxu1 }
 0x207   : > { %v607_v37 = vmul.f32 %v602_v35, %v1541_v16  ;;  %v617_v40 = vmax.f32 %v615_v36, 0.0 }
 0x208   : > { %v1045_v38 = vpop.f32.mrf.mxu1 }
 0x209   : > { %v616_v39 = vadd.f32 %v976_v33, %v607_v37 }
 0x20b   : > { %v618_v41 = vmax.f32 %v616_v39, 0.0 }
 0x20d   : > { %v619_v42 = vpack.c.bf16 %v618_v41, %v617_v40 }
 0x20f   : > { %1063 = vmatmul.mubr.bf16.vlgmr.msra.gmra.mxu1 %v619_v42 }
 0x2cf   : > { %v718_v43 = vpop.f32.mrf.mxu1 }
 0x2d0   : > { %v725_v46 = vmul.f32 %v718_v43, %v1539_v13 }
 0x2d1   : > { %v1064_v44 = vpop.f32.mrf.mxu1 }
 0x2d3   : > { %v721_v45 = vpop.f32.mrf.mxu1 }
 0x2d4   : > { %v726_v47 = vmul.f32 %v721_v45, %v1541_v16 }
 0x2d5   : > { %v1065_v48 = vpop.f32.mrf.mxu1 }
 0x2d6   : > { %v727_v49 = vpack.c.bf16 %v726_v47, %v725_v46 }
 0x2d8   : > { %1067 = vmatpush3.bf16.msra.mxu0 %v727_v49 }
 0x2db   : > { %1069 = vmatmul.mubr.msk.bf16.vlgmr.msra.gmra.mxu0 %vm561_vm1, %v1140_v22 }
 0x39b   : > { %v762_v50 = vpop.f32.mrf.mxu0 }
 0x39c   : > { %v769_v52 = vmul.f32 %v762_v50, %v1539_v13 }
 0x39d   : > { %v1070_v53 = vpop.f32.mrf.mxu0 }
 0x39e   : > { %v778_v54 = vadd.f32 %v986_v51, %v769_v52 }
 0x39f   : > { %v765_v55 = vpop.f32.mrf.mxu0 }
 0x3a0   : > { %780 = vst [vmem:[%s403_s3] sm:$0xff] %v778_v54  ;;  %v770_v56 = vmul.f32 %v765_v55, %v1541_v16 }
 0x3a1   : > { %v1071_v57 = vpop.f32.mrf.mxu0 }
 0x3a2   : > { %v779_v58 = vadd.f32 %v986_v51, %v770_v56 }
 0x3a4   : > { %781 = vst [vmem:[%s403_s3 + $0x8] sm:$0xff] %v779_v58 }
 0x3a5   : > { %1218 = shalt.err (!%p1215_p9)
}
 0x3a6   : > { %s1219_s11 = scalar_lea.hbm %s1587_s22, 256  ;;  %s1223_s9 = scalar_lea.hbm %s1637_s7, 512 }
 0x3a7   : > { %p1220_p11 = scmp.ne.s32.totalorder %s1587_s22, %s1219_s11  ;;  %p1224_p8 = scmp.lt.s32.totalorder %s1587_s22, %s1637_s7 }
 0x3a8   : > { %p1225_p6 = scmp.lt.s32.totalorder %s1223_s9, %s1219_s11 }
 0x3a9   : > { %p1221_p3 = pnand %p1220_p11, %p1656_p12 }
 0x3aa   : > { %p1226_p13 = por %p1225_p6, %p1224_p8 }
 0x3ab   : > { %p1222_p5 = pneg %p1221_p3 }
 0x3ad   : > { %p1227_p1 = pnand %p1226_p13, %p1222_p5 }
 0x3af   : > { %1230 = shalt.err (!%p1227_p1)
}
 0x3b0   : > { %s1283_s8 = smov 128   ;;  %s1284_s12 = smov 8  }
 0x3b1   : > { %1076 = dma.vmem_to_hbm [thread:$0]  (%p1656_p12), %s1581_s15, 256, %s1587_s22, %s783_s17, %s1283_s8, %s1283_s8, %s1284_s12  }
 0x3b2 PF: > { %s811_s18 = sand.u32 1, %s1261_s24   ;;  %p1657_p7 = scmp.ne.s32.totalorder %s1648_s14, 0 }
 0x3b3   : > { %p1658_p10 = scmp.ge.s32.totalorder %s1273_s27, 2  ;;  %s812_s19 = scalar_lea.sflag [#allocation4], %s811_s18 }
 0x3b5   : > { %p1086_p0 = pnand %p1658_p10, %p1657_p7 }
 0x3b7   : > { %p1087_p2 = pneg %p1086_p0 }
 0x3b9   : > { %1256 = dma.done.wait (%p1087_p2), %s812_s19, 256  }
 0x3ba   : > { %1258 = vsyncadd (%p1087_p2), %s812_s19, 4294967040  ;;  %s1659_s28 = sld [smem:[#allocation11_spill]]  ;;  %p23_p4 = scmp.ge.s32.totalorder %s1350_s30, 4  }
 0x3bb   : > { %s1660_s24 = smov %s1265_s25  ;;  %s1661_s25 = smov %s1269_s26 }
 0x3bc   : > { %s1663_s27 = smov %s1350_s30  ;;  %25 = sbr.rel (!%p23_p4) target bundleno = 9 (0x9), region = 121 }
 0x3c0   : > { %s1662_s26 = smov %s1659_s28 }
 0x3c1   :  { %817 = vsyncpa [#allocation3], 1 }
 0x3c2   :  { %819 = vsyncpa [#allocation3 + $0x1], 1 }
 0x3c3   :  { %820 = vsyncpa [#allocation6], 1 }
 0x3c4   :  { %822 = vsyncpa [#allocation6 + $0x1], 1 }
 0x3c5   :  { %823 = vsyncpa [#allocation4], 1 }
 0x3c6   :  { %825 = vsyncpa [#allocation4 + $0x1], 1 }

</bundles_post_ra>
